<compile_context>
chip_gen: v7x
topology: tpu7x:2x2x1
jax: 0.10.0
libtpu: 0.0.40
codegen_flags: <defaults>
</compile_context>

<pallas_src>
import jax
import jax.numpy as jnp
from jax import lax
from jax.experimental import pallas as pl
from jax.experimental.pallas import tpu as pltpu


def _round_up(x: int, m: int) -> int:
    return (x + m - 1) // m * m


def _pos_enc_kernel(idx_ref, tok_ref, emb_ref, out_ref):
    # idx_ref : VMEM (TS, 1)  int32   per-row position indices
    # tok_ref : VMEM (TS, Dp)         token tile
    # emb_ref : VMEM (C,  Dp)         full embedding table (constant index_map)
    # out_ref : VMEM (TS, Dp)
    ts = idx_ref.shape[0]
    c = emb_ref.shape[0]

    # Vectorized gather: one-hot selection matrix @ table on the MXU.
    idx = idx_ref[...]                                               # (TS, 1)
    onehot = (idx == lax.broadcasted_iota(jnp.int32, (ts, c), 1)
              ).astype(emb_ref.dtype)                                # (TS, C)
    gathered = jnp.dot(onehot, emb_ref[...],
                       preferred_element_type=jnp.float32)           # (TS, Dp) f32

    out_ref[...] = (tok_ref[...].astype(jnp.float32) + gathered
                    ).astype(out_ref.dtype)


def learned_positional_encoding(tokens: jax.Array,
                                pos_indices: jax.Array,
                                emb_table: jax.Array,
                                *,
                                row_tile: int = 512) -> jax.Array:
    """tokens: (B, S, D) float; pos_indices: (B, S) int; emb_table: (C, D)."""
    B, S, D = tokens.shape
    C, D2 = emb_table.shape
    assert D == D2, "embed_dim mismatch between tokens and embedding table"

    # ---- wrapper-side layout plumbing (cheap, fused by XLA) ----------------
    # Clamp indices: no runtime bounds check inside the kernel on TPU.
    idx = jnp.clip(pos_indices.astype(jnp.int32), 0, C - 1)

    # Flatten to rows; batch structure is irrelevant to the gather+add.
    N = B * S
    tok = tokens.reshape(N, D)
    idx = idx.reshape(N, 1)

    # Lane-dense last dim: pad D up to a multiple of 128 (no-op for real dims).
    Dp = _round_up(D, 128)
    if Dp != D:
        tok = jnp.pad(tok, ((0, 0), (0, Dp - D)))
        emb = jnp.pad(emb_table, ((0, 0), (0, Dp - D)))
    else:
        emb = emb_table

    # Row tile: multiple of 8, capped at `row_tile`; pad rows to a multiple.
    TS = min(row_tile, _round_up(N, 8))
    Np = _round_up(N, TS)
    if Np != N:
        tok = jnp.pad(tok, ((0, Np - N), (0, 0)))
        idx = jnp.pad(idx, ((0, Np - N), (0, 0)))   # padded rows gather row 0

    grid = (Np // TS,)

    # Explicit VMEM budget: double-buffered tok/out/idx tiles + table
    # (constant index_map -> fetched once, but allocator sees 2 buffers).
    tok_bytes = jnp.dtype(tokens.dtype).itemsize
    emb_bytes = jnp.dtype(emb.dtype).itemsize
    need = (2 * TS * Dp * tok_bytes      # tokens
            + 2 * TS * Dp * tok_bytes    # output
            + 2 * TS * 4                 # indices
            + 2 * C * Dp * emb_bytes)    # table
    vmem_limit = int(min(max(2 * need, 32 * 1024 * 1024), 64 * 1024 * 1024))

    grid_spec = pltpu.PrefetchScalarGridSpec(
        num_scalar_prefetch=0,
        grid=grid,
        in_specs=[
            pl.BlockSpec((TS, 1), lambda i: (i, 0)),    # indices (VMEM int32)
            pl.BlockSpec((TS, Dp), lambda i: (i, 0)),   # tokens
            pl.BlockSpec((C, Dp), lambda i: (0, 0)),    # full table, fetched once
        ],
        out_specs=pl.BlockSpec((TS, Dp), lambda i: (i, 0)),
    )

    out = pl.pallas_call(
        _pos_enc_kernel,
        out_shape=jax.ShapeDtypeStruct((Np, Dp), tokens.dtype),
        grid_spec=grid_spec,
        compiler_params=pltpu.CompilerParams(
            # Row tiles are independent -> shard across TensorCores (v7x megacore).
            dimension_semantics=("parallel",),
            vmem_limit_bytes=vmem_limit,
        ),
    )(idx, tok, emb)

    # Strip padding and restore (B, S, D).
    return out[:N, :D].reshape(B, S, D)


if __name__ == "__main__":
    # Small shapes consistent with the module's forward.
    B, S, D = 2, 8, 32          # batch, sequence length, embed_dim
    C = 16                      # context_length

    key = jax.random.PRNGKey(0)
    k_tok, k_emb, k_pos = jax.random.split(key, 3)

    tokens = jax.random.normal(k_tok, (B, S, D), dtype=jnp.float32)
    # Deterministic "learned" embedding table (stands in for nn.Embedding weight).
    emb_table = jax.random.normal(k_emb, (C, D), dtype=jnp.float32)
    pos_indices = jax.random.randint(k_pos, (B, S), 0, C, dtype=jnp.int32)

    out = learned_positional_encoding(tokens, pos_indices, emb_table)
    out = jax.block_until_ready(out)

    # Reference check (plain JAX) to validate semantics.
    ref = tokens + emb_table[pos_indices]
    assert out.shape == ref.shape and out.dtype == ref.dtype
    assert jnp.allclose(out, ref, atol=1e-5, rtol=1e-5), "mismatch vs reference"

    print("KERNEL_OK")
</pallas_src>

<mosaic_0001>
module attributes {stable_mosaic.version = 11 : i64} {
  func.func @_pos_enc_kernel(%arg0: i32, %arg1: memref<16x1xi32, #tpu.memory_space<vmem>>, %arg2: memref<16x128xf32, #tpu.memory_space<vmem>>, %arg3: memref<16x128xf32, #tpu.memory_space<vmem>>, %arg4: memref<16x128xf32, #tpu.memory_space<vmem>>) attributes {dimension_semantics = [#tpu.dimension_semantics<parallel>], iteration_bounds = array<i64: 1>, scalar_prefetch = 0 : i64, scratch_operands = 0 : i64, tpu.core_type = #tpu.core_type<tc>, window_params = [{transform_indices = @transform_0, window_bounds = array<i64: 16, 1>}, {transform_indices = @transform_1, window_bounds = array<i64: 16, 128>}, {pipeline_mode = #tpu.pipeline_mode<synchronous>, transform_indices = @transform_2, window_bounds = array<i64: 16, 128>}, {transform_indices = @transform_3, window_bounds = array<i64: 16, 128>}]} {
    %c0 = arith.constant 0 : index
    %c0_0 = arith.constant 0 : index
    %0 = vector.load %arg1[%c0, %c0_0] : memref<16x1xi32, #tpu.memory_space<vmem>>, vector<16x1xi32>
    %1 = tpu.iota {dimensions = array<i32: 1>} : vector<16x16xi32>
    %2 = vector.broadcast %0 : vector<16x1xi32> to vector<16x16xi32>
    %3 = arith.cmpi eq, %2, %1 : vector<16x16xi32>
    %4 = arith.extui %3 : vector<16x16xi1> to vector<16x16xi32>
    %5 = arith.sitofp %4 : vector<16x16xi32> to vector<16x16xf32>
    %c0_1 = arith.constant 0 : index
    %c0_2 = arith.constant 0 : index
    %6 = vector.load %arg3[%c0_1, %c0_2] : memref<16x128xf32, #tpu.memory_space<vmem>>, vector<16x128xf32>
    %cst = arith.constant dense<0.000000e+00> : vector<16x128xf32>
    %7 = tpu.matmul %5, %6, %cst {dimension_numbers = #tpu.dot_dimension_numbers<[1], [0], [0], [1], [0, 0, 1, 1], [], []>} : vector<16x16xf32>, vector<16x128xf32>, vector<16x128xf32> -> vector<16x128xf32>
    %c0_3 = arith.constant 0 : index
    %c0_4 = arith.constant 0 : index
    %8 = vector.load %arg2[%c0_3, %c0_4] : memref<16x128xf32, #tpu.memory_space<vmem>>, vector<16x128xf32>
    %9 = arith.addf %8, %7 : vector<16x128xf32>
    %c0_5 = arith.constant 0 : index
    %c0_6 = arith.constant 0 : index
    %10 = vector.load %arg4[%c0_5, %c0_6] : memref<16x128xf32, #tpu.memory_space<vmem>>, vector<16x128xf32>
    tpu.vector_store %arg4[%c0_5, %c0_6], %9 {strides = array<i32>} : memref<16x128xf32, #tpu.memory_space<vmem>>, vector<16x128xf32>,
    return
  }
  func.func @transform_0(%arg0: i32) -> (i32, i32) {
    %c0_i32 = arith.constant 0 : i32
    %c0_i32_0 = arith.constant 0 : i32
    return %arg0, %c0_i32 : i32, i32
  }
  func.func @transform_1(%arg0: i32) -> (i32, i32) {
    %c0_i32 = arith.constant 0 : i32
    %c0_i32_0 = arith.constant 0 : i32
    return %arg0, %c0_i32 : i32, i32
  }
  func.func @transform_2(%arg0: i32) -> (i32, i32) {
    %c0_i32 = arith.constant 0 : i32
    %c0_i32_0 = arith.constant 0 : i32
    %c0_i32_1 = arith.constant 0 : i32
    return %c0_i32, %c0_i32_0 : i32, i32
  }
  func.func @transform_3(%arg0: i32) -> (i32, i32) {
    %c0_i32 = arith.constant 0 : i32
    %c0_i32_0 = arith.constant 0 : i32
    return %arg0, %c0_i32 : i32, i32
  }
}

</mosaic_0001>

<bundles_post_ra>
// kernel: tpu_custom_call.1
= control target key start
LH: loop header
LB: loop body
LE: loop exit
PB: predicated region body
PF: predicated region fallthrough
CT: control target
= control target key end

     0   :  { %8 = vsyncpa [#allocation3], 0  ;;  %s294_s0 = inlined_call_operand.vmem [shape: s32[16,1], index: 0, kind: input, shape index: {}]   ;;  %s295_s1 = inlined_call_operand.vmem [shape: f32[16,128], index: 1, kind: input, shape index: {}]   ;;  %s296_s2 = inlined_call_operand.hbm [shape: f32[16,128], index: 2, kind: input, shape index: {}]   ;;  %s297_s3 = inlined_call_operand.hbm [shape: f32[16,128], index: 3, kind: output, shape index: {}]  }
   0x1   :  { %9 = vsyncpa [#allocation4], 0  ;;  %s226_s12 = smov [#allocation2]   ;;  %s178_s16 = scalar_lea.hbm %s296_s2, 256 }
   0x2   :  { %s19_s13 = sshll.u32 %s226_s12, 4  ;;  %p179_p0 = scmp.ne.s32.totalorder %s296_s2, %s178_s16  ;;  %s20_s13 = int_to_ptr.vmem [resolvable:$true] %s19_s13 }
   0x3   :  { %p182_p1 = scmp.lt.u32.totalorder %s178_s16, %s296_s2 }
   0x5   :  { %p184_p2 = pnand %p182_p1, %p179_p0 }
   0x7   :  { %187 = shalt.err (!%p184_p2)
}
   0x8   :  { %s188_s21 = scalar_lea.vmem %s20_s13, 256  ;;  %p193_p4 = scmp.lt.s32.totalorder %s20_s13, %s20_s13 }
   0x9   :  { %p189_p3 = scmp.ne.s32.totalorder %s20_s13, %s188_s21  ;;  %p194_p5 = scmp.lt.s32.totalorder %s188_s21, %s188_s21 }
   0xb   :  { %p195_p6 = por %p194_p5, %p193_p4 }
   0xd   :  { %p196_p7 = pnand %p195_p6, %p189_p3 }
   0xf   :  { %199 = shalt.err (!%p196_p7)
}
  0x10   :  { %s227_s22 = smov 128   ;;  %s228_s23 = smov 8  }
  0x11   :  { %25 = dma.hbm_to_vmem [thread:$0]  %s296_s2, 256, %s20_s13, [#allocation3], %s227_s22, %s227_s22, %s228_s23  }
  0x12   :  { %222 = dma.done.wait [#allocation3], 256  }
  0x13   :  { %223 = vsyncadd [#allocation3], 4294967040  ;;  %v229_v0 = vmov 0   ;;  %v29_v1 = vld [vmem:[%s294_s0] sm:$0xff]  ;;  %v46_v3 = vld [vmem:[#allocation2 + $0x8] sm:$0xff]  ;;  %v31_v6 = vlaneseq  ;;  %vm47_vm0 = vcmask 130048  }
  0x14   :  { %177 = vset.pattern.permute.xlu0 %v229_v0  ;;  %v45_v2 = vld [vmem:[#allocation2] sm:$0xff]  ;;  %v30_v4 = vld [vmem:[%s294_s0 + $0x8] sm:$0xff]  ;;  %v230_v9 = vmov 0.0   ;;  %s231_s5 = smov [#allocation5]  }
  0x15   :  { %34 = vperm.xlu0 %177, %v29_v1   ;;  %v167_v5 = vpack.c.bf16 %v46_v3, %v45_v2  ;;  %v32_v7 = vand.u32 127, %v31_v6  ;;  %v130_v13 = vld [vmem:[%s295_s1 + $0x8] sm:$0xff]  ;;  %v129_v14 = vld [vmem:[%s295_s1] sm:$0xff]  ;;  %s140_s6 = sshll.u32 %s231_s5, 4  ;;  %s141_s6 = int_to_ptr.vmem [resolvable:$true] %s140_s6 }
  0x16   :  { %s200_s7 = scalar_lea.vmem %s141_s6, 256  ;;  %p205_p9 = scmp.lt.s32.totalorder %s141_s6, %s141_s6 }
  0x17   :  { %168 = vmatprep.subr.bf16.mxu0 %v167_v5  ;;  %p201_p8 = scmp.ne.s32.totalorder %s141_s6, %s200_s7  ;;  %p206_p10 = scmp.lt.s32.totalorder %s200_s7, %s200_s7 }
  0x18   :  { %170 = vmatpush3.bf16.msra.mxu0 %v167_v5 }
  0x19   :  { %37 = vperm.xlu0 %177, %v30_v4   ;;  %p207_p11 = por %p206_p10, %p205_p9 }
  0x1b   :  { %p208_p12 = pnand %p207_p11, %p201_p8 }
  0x94   :  { %v35_v8 = vpop.permute.xlu0 %34 }
  0x95   :  { %vm39_vm1 = vcmp.eq.s32.totalorder %v35_v8, %v32_v7 }
  0x96   :  { %v152_v10 = vsel %vm39_vm1, 1.0, %v230_v9 }
  0x97   :  { %164 = vmatprep.mubr.msk.f32.mxu0 %vm47_vm0, %v152_v10 }
  0x98   :  { %v38_v11 = vpop.permute.xlu0 %37 }
  0x99   :  { %vm40_vm2 = vcmp.eq.s32.totalorder %v38_v11, %v32_v7 }
  0x9a   :  { %v153_v12 = vsel %vm40_vm2, 1.0, %v230_v9 }
  0x9b   :  { %165 = vmatmul.mubr.msk.f32.vlgmr.msra.gmra.mrb[0].mxu0 %vm47_vm0, %v153_v12 }
 0x16e   :  { %v166_v15 = vpop.f32.mrb[0].mxu0 }
 0x16f   :  { %v132_v16 = vadd.f32 %v166_v15, %v130_v13  ;;  %v120_v17 = vpop.f32.mrb[1].mxu0 }
 0x170   :  { %v131_v18 = vadd.f32 %v129_v14, %v120_v17 }
 0x171   :  { %134 = vst [vmem:[#allocation5 + $0x8] sm:$0xff] %v132_v16 }
 0x172   :  { %133 = vst [vmem:[#allocation5] sm:$0xff] %v131_v18 }
 0x173   :  { %211 = shalt.err (!%p208_p12)
}
 0x174   :  { %s212_s1 = scalar_lea.hbm %s297_s3, 256 }
 0x175   :  { %p213_p13 = scmp.ne.s32.totalorder %s297_s3, %s212_s1  ;;  %p216_p0 = scmp.lt.u32.totalorder %s212_s1, %s297_s3 }
 0x177   :  { %p218_p1 = pnand %p216_p0, %p213_p13 }
 0x179   :  { %221 = shalt.err (!%p218_p1)
}
 0x17a   :  { %146 = dma.vmem_to_hbm [thread:$0]  %s141_s6, 256, %s297_s3, [#allocation4], %s227_s22, %s227_s22, %s228_s23  }
 0x17b   :  { %224 = dma.done.wait [#allocation4], 256  }
 0x17c   :  { %225 = vsyncadd [#allocation4], 4294967040 }
 0x17d   :  { %150 = vsyncpa [#allocation3], 1 }
 0x17e   :  { %151 = vsyncpa [#allocation4], 1 }

</bundles_post_ra>
